<compile_context>
chip_gen: v6e
topology: v6e:2x2x1
jax: 0.10.0
libtpu: 0.0.40
codegen_flags: <defaults>
</compile_context>

<pallas_src>
import functools

import jax
import jax.numpy as jnp
from jax.experimental import pallas as pl
from jax.experimental.pallas import tpu as pltpu

_LANE = 128
_SUBLANE = 8


def _round_up(x, m):
    return ((x + m - 1) // m) * m


def _patch_embed_kernel(x_ref, w_ref, b_ref, o_ref):
    # x_ref: (TM, Kp) streamed patch tile; w_ref: (Kp, Ep) resident weight;
    # b_ref: (1, Ep) resident bias; o_ref: (TM, Ep) output tile.
    acc = jnp.dot(x_ref[...], w_ref[...], preferred_element_type=jnp.float32)
    o_ref[...] = (acc + b_ref[...].astype(jnp.float32)).astype(o_ref.dtype)


def _choose_tile_m(m_rows, kp, ep, dtype_bytes,
                   budget_bytes=24 << 20, tm_max=1024):
    """Largest multiple of 8 (<= tm_max, <= padded M) whose double-buffered
    input+output tiles plus the resident weight/bias buffers fit the budget.
    Also keeps >= 2 grid blocks when M is large enough (megacore/pipelining)."""
    m_pad = _round_up(max(m_rows, _SUBLANE), _SUBLANE)
    tm = min(tm_max, m_pad)
    # Ensure at least two grid steps when there is enough work to split.
    if m_pad >= 2 * _SUBLANE and tm >= m_pad:
        tm = _round_up((m_pad + 1) // 2, _SUBLANE)
    fixed = 2 * kp * ep * dtype_bytes + 2 * ep * dtype_bytes  # weight + bias bufs
    while tm > _SUBLANE:
        need = fixed + 2 * tm * (kp + ep) * dtype_bytes
        if need <= budget_bytes:
            break
        tm = max(_SUBLANE, _round_up(tm // 2, _SUBLANE))
    return max(tm, _SUBLANE)


@functools.partial(jax.jit, static_argnums=(3, 4, 5, 6))
def patch_embed_forward(x, weight, bias, patch_size, stride, flatten=True,
                        scan_mode="default"):
    """x: (B, C, H, W). weight: (E, C, ph, pw). bias: (E,).
    Returns (tokens, (new_H, new_W)) matching V1PatchEmbed.forward."""
    B, C, H, W = x.shape
    E, Cw, ph, pw = weight.shape
    assert Cw == C and ph == patch_size and pw == patch_size
    assert stride == patch_size, "non-overlapping patches assumed (stride == patch_size)"
    assert scan_mode in ("default", "zigzag")

    gh = (H - ph) // stride + 1
    gw = (W - pw) // stride + 1
    num_patches = gh * gw

    # --- glue: extract non-overlapping patches; K axis ordered (C, ph, pw) to
    # match the PyTorch weight layout. Runs inside the same jit as the kernel.
    # TODO(synk): fold this relayout into the kernel (strip BlockSpec over
    # (b, gh) + in-VMEM reshape) to remove the extra HBM pass on huge inputs.
    xp = x.reshape(B, C, gh, ph, gw, pw)
    xp = jnp.transpose(xp, (0, 2, 4, 1, 3, 5))
    patches = xp.reshape(B * num_patches, C * ph * pw)

    w_mat = weight.reshape(E, C * ph * pw).T.astype(x.dtype)   # (K, E)
    b_mat = bias.reshape(1, E).astype(x.dtype)                 # (1, E)

    M, K = patches.shape
    dtype_bytes = jnp.dtype(x.dtype).itemsize

    # Lane-align the contraction (K) and output (E) dims; zero padding is exact.
    Kp = _round_up(K, _LANE)
    Ep = _round_up(E, _LANE)
    if Kp != K:
        patches = jnp.pad(patches, ((0, 0), (0, Kp - K)))
        w_mat = jnp.pad(w_mat, ((0, Kp - K), (0, 0)))
    if Ep != E:
        w_mat = jnp.pad(w_mat, ((0, 0), (0, Ep - E)))
        b_mat = jnp.pad(b_mat, ((0, 0), (0, Ep - E)))

    # Tile M and pad it to a multiple of the tile so every block is full.
    TM = _choose_tile_m(M, Kp, Ep, dtype_bytes)
    Mp = _round_up(M, TM)
    if Mp != M:
        patches = jnp.pad(patches, ((0, Mp - M), (0, 0)))

    grid = (Mp // TM,)
    vmem_need = (2 * TM * (Kp + Ep) + 2 * Kp * Ep + 2 * Ep) * dtype_bytes
    vmem_limit = int(min(max(vmem_need * 3 // 2, 16 << 20), 48 << 20))

    cost = pl.CostEstimate(
        flops=2 * Mp * Kp * Ep,
        transcendentals=0,
        bytes_accessed=dtype_bytes * (Mp * Kp + Kp * Ep + Mp * Ep + Ep),
    )

    out_padded = pl.pallas_call(
        _patch_embed_kernel,
        out_shape=jax.ShapeDtypeStruct((Mp, Ep), x.dtype),
        grid=grid,
        in_specs=[
            pl.BlockSpec((TM, Kp), lambda i: (i, 0)),   # streamed patch-row tiles
            pl.BlockSpec((Kp, Ep), lambda i: (0, 0)),   # weight resident in VMEM
            pl.BlockSpec((1, Ep), lambda i: (0, 0)),    # bias resident in VMEM
        ],
        out_specs=pl.BlockSpec((TM, Ep), lambda i: (i, 0)),
        compiler_params=pltpu.CompilerParams(
            dimension_semantics=("parallel",),          # shard M over v7x's 2 TCs
            vmem_limit_bytes=vmem_limit,
        ),
        cost_estimate=cost,
    )(patches, w_mat, b_mat)

    out = out_padded[:M, :E].reshape(B, num_patches, E)

    if flatten:
        if scan_mode == "zigzag":
            out4 = out.reshape(B, gh, gw, E)
            out4 = out4.at[:, 1::2, :, :].set(out4[:, 1::2, ::-1, :])
            out = out4.reshape(B, num_patches, E)
        # 'default': already (B, num_patches, E) = flatten(2).transpose(1,2)
    else:
        # NCHW conv output when flatten=False
        out = out.reshape(B, gh, gw, E).transpose(0, 3, 1, 2)

    # norm_layer=None -> Identity
    return out, (gh, gw)


if __name__ == "__main__":
    # Small, module-consistent shapes:
    # img_size=16, patch_size=4, stride=4, in_chans=4, embed_dim=32, batch=2
    B, C, H, W = 2, 4, 16, 16
    patch = 4
    stride = 4
    embed_dim = 32

    key = jax.random.PRNGKey(0)
    kx, kw, kb = jax.random.split(key, 3)
    x = jax.random.normal(kx, (B, C, H, W), dtype=jnp.float32)
    weight = jax.random.normal(kw, (embed_dim, C, patch, patch),
                               dtype=jnp.float32) * 0.02
    bias = jax.random.normal(kb, (embed_dim,), dtype=jnp.float32) * 0.02

    out, (new_H, new_W) = patch_embed_forward(x, weight, bias, patch, stride)
    out = jax.block_until_ready(out)

    # Reference: same conv-as-matmul semantics in plain JAX.
    gh, gw = H // stride, W // stride
    xp = x.reshape(B, C, gh, patch, gw, patch)
    xp = jnp.transpose(xp, (0, 2, 4, 1, 3, 5)).reshape(B * gh * gw, -1)
    ref = (xp @ weight.reshape(embed_dim, -1).T + bias).reshape(B, gh * gw, embed_dim)

    assert out.shape == (B, gh * gw, embed_dim)
    assert int(new_H) == gh and int(new_W) == gw
    assert jnp.allclose(out, ref, atol=1e-4, rtol=1e-4)

    # Zigzag scan mode check (flip odd grid rows along W before flattening).
    out_z, _ = patch_embed_forward(x, weight, bias, patch, stride, True, "zigzag")
    out_z = jax.block_until_ready(out_z)
    ref_z = ref.reshape(B, gh, gw, embed_dim)
    ref_z = ref_z.at[:, 1::2, :, :].set(ref_z[:, 1::2, ::-1, :])
    ref_z = ref_z.reshape(B, gh * gw, embed_dim)
    assert jnp.allclose(out_z, ref_z, atol=1e-4, rtol=1e-4)

    print("KERNEL_OK")
</pallas_src>

<mosaic_0001>
module attributes {stable_mosaic.version = 11 : i64} {
  func.func @_patch_embed_kernel(%arg0: i32, %arg1: memref<16x128xf32, #tpu.memory_space<vmem>>, %arg2: memref<128x128xf32, #tpu.memory_space<vmem>>, %arg3: memref<1x128xf32, #tpu.memory_space<vmem>>, %arg4: memref<16x128xf32, #tpu.memory_space<vmem>>) attributes {dimension_semantics = [#tpu.dimension_semantics<parallel>], iteration_bounds = array<i64: 2>, scalar_prefetch = 0 : i64, scratch_operands = 0 : i64, tpu.core_type = #tpu.core_type<tc>, window_params = [{transform_indices = @transform_0, window_bounds = array<i64: 16, 128>}, {pipeline_mode = #tpu.pipeline_mode<synchronous>, transform_indices = @transform_1, window_bounds = array<i64: 128, 128>}, {pipeline_mode = #tpu.pipeline_mode<synchronous>, transform_indices = @transform_2, window_bounds = array<i64: 1, 128>}, {transform_indices = @transform_3, window_bounds = array<i64: 16, 128>}]} {
    %c0 = arith.constant 0 : index
    %c0_0 = arith.constant 0 : index
    %0 = vector.load %arg1[%c0, %c0_0] : memref<16x128xf32, #tpu.memory_space<vmem>>, vector<16x128xf32>
    %c0_1 = arith.constant 0 : index
    %c0_2 = arith.constant 0 : index
    %1 = vector.load %arg2[%c0_1, %c0_2] : memref<128x128xf32, #tpu.memory_space<vmem>>, vector<128x128xf32>
    %cst = arith.constant dense<0.000000e+00> : vector<16x128xf32>
    %2 = tpu.matmul %0, %1, %cst {dimension_numbers = #tpu.dot_dimension_numbers<[1], [0], [0], [1], [0, 0, 1, 1], [], []>} : vector<16x128xf32>, vector<128x128xf32>, vector<16x128xf32> -> vector<16x128xf32>
    %c0_3 = arith.constant 0 : index
    %c0_4 = arith.constant 0 : index
    %3 = vector.load %arg3[%c0_3, %c0_4] : memref<1x128xf32, #tpu.memory_space<vmem>>, vector<1x128xf32>
    %4 = vector.broadcast %3 : vector<1x128xf32> to vector<16x128xf32>
    %5 = arith.addf %2, %4 : vector<16x128xf32>
    %c0_5 = arith.constant 0 : index
    %c0_6 = arith.constant 0 : index
    %6 = vector.load %arg4[%c0_5, %c0_6] : memref<16x128xf32, #tpu.memory_space<vmem>>, vector<16x128xf32>
    tpu.vector_store %arg4[%c0_5, %c0_6], %5 {strides = array<i32>} : memref<16x128xf32, #tpu.memory_space<vmem>>, vector<16x128xf32>,
    return
  }
  func.func @transform_0(%arg0: i32) -> (i32, i32) {
    %c0_i32 = arith.constant 0 : i32
    %c0_i32_0 = arith.constant 0 : i32
    return %arg0, %c0_i32 : i32, i32
  }
  func.func @transform_1(%arg0: i32) -> (i32, i32) {
    %c0_i32 = arith.constant 0 : i32
    %c0_i32_0 = arith.constant 0 : i32
    %c0_i32_1 = arith.constant 0 : i32
    return %c0_i32, %c0_i32_0 : i32, i32
  }
  func.func @transform_2(%arg0: i32) -> (i32, i32) {
    %c0_i32 = arith.constant 0 : i32
    %c0_i32_0 = arith.constant 0 : i32
    %c0_i32_1 = arith.constant 0 : i32
    return %c0_i32, %c0_i32_0 : i32, i32
  }
  func.func @transform_3(%arg0: i32) -> (i32, i32) {
    %c0_i32 = arith.constant 0 : i32
    %c0_i32_0 = arith.constant 0 : i32
    return %arg0, %c0_i32 : i32, i32
  }
}

</mosaic_0001>

<bundles_post_ra>
// kernel: patch_embed_forward.1
= control target key start
LH: loop header
LB: loop body
LE: loop exit
PB: predicated region body
PF: predicated region fallthrough
CT: control target
= control target key end

     0   :  { %8 = vsyncpa [#allocation3], 0  ;;  %s699_s0 = inlined_call_operand.vmem [shape: f32[32,128], index: 0, kind: input, shape index: {}]   ;;  %s700_s1 = inlined_call_operand.vmem [shape: f32[128,128], index: 1, kind: input, shape index: {}]   ;;  %s701_s2 = inlined_call_operand.vmem [shape: f32[1,128], index: 2, kind: input, shape index: {}]   ;;  %s702_s3 = inlined_call_operand.hbm [shape: f32[32,128], index: 3, kind: output, shape index: {}]  }
   0x1   :  { %10 = vsyncpa [#allocation3 + $0x1], 0  ;;  %s543_s12 = smov 0   ;;  %s545_s13 = smov 0  }
   0x2   :  { %s547_s14 = smov 0   ;;  %s549_s15 = smov 0  }
   0x3 LB: > { %s564_s16 = sadd.s32 4294967295, %s518_s15   ;;  %s350_s17 = sadd.s32 4294967294, %s518_s15   ;;  %s518_s15 = sphi %s549_s15, %s708_s15   ;;  %s514_s14 = sphi %s547_s14, %s707_s14   ;;  %s510_s13 = sphi %s545_s13, %s706_s13   ;;  %s506_s12 = sphi %s543_s12, %s705_s12  }
   0x4   : > { %s568_s18 = sadd.s32 1, %s518_s15   ;;  %s91_s19 = sadd.s32 1, %s514_s14 }
   0x5   : > { %s88_s20 = ssub.s32 %s518_s15, %s568_s18  ;;  %p101_p0 = scmp.ne.s32.totalorder %s514_s14, %s510_s13 }
   0x6   : > { %p89_p1 = scmp.eq.s32.totalorder %s88_s20, 0  ;;  %p102_p2 = scmp.eq.s32.totalorder %s564_s16, 1 }
   0x7   : > { %p107_p3 = scmp.ne.s32.totalorder %s510_s13, %s506_s12  ;;  %p108_p4 = scmp.eq.s32.totalorder %s350_s17, 1 }
   0x8   : > { %s579_s21 = scalar_select %p89_p1, %s514_s14, %s91_s19  }
   0x9   : > { %p581_p5 = por %p102_p2, %p101_p0  ;;  %p585_p6 = por %p108_p4, %p107_p3 }
   0xa   : > { %p353_p7 = scmp.ge.s32.totalorder %s518_s15, 1  ;;  %p141_p8 = scmp.lt.s32.totalorder %s518_s15, 3 }
   0xc   : > { %p142_p9 = pnand %p353_p7, %p141_p8 }
   0xd   : > { %s355_s28 = sshll.u32 (!%p142_p9), %s564_s16, 1  ;;  %s162_s26 = sand.u32 (!%p142_p9), 1, %s510_s13  }
   0xe   : > { %145 = sbr.rel (%p142_p9) target bundleno = 263 (0x107), region = 32  ;;  %p166_p10 = scmp.lt.s32.totalorder (!%p142_p9), %s355_s28, 3 }
   0xf   : > { %s354_s27 = sshll.u32 (!%p142_p9), %s162_s26, 4  ;;  %s363_s5 = sshll.u32 (!%p142_p9), %s564_s16, 8 }
  0x10   : > { %s164_s30 = scalar_lea.vmem (!%p142_p9), [#allocation2], %s354_s27  ;;  %s657_s7 = scalar_lea.hbm (!%p142_p9), %s702_s3, %s363_s5 }
  0x11   : > { %s288_s4 = sshll.u32 (!%p142_p9), %s164_s30, 4  ;;  %s659_s8 = scalar_lea.sflag (!%p142_p9), [#allocation3], %s162_s26  ;;  %s652_s4 = int_to_ptr.vmem [resolvable:$true] %s288_s4 }
  0x12   : > { %s458_s9 = scalar_lea.vmem (!%p142_p9), %s652_s4, 256  ;;  %s520_s16 = smov (!%p142_p9), [#allocation2]  }
  0x13   : > { %v189_v0 = vld [vmem:[%s700_s1 + $0x78] sm:$0xff]  ;;  %v188_v1 = vld [vmem:[%s700_s1 + $0x70] sm:$0xff]  ;;  %v187_v2 = vld [vmem:[%s700_s1 + $0x68] sm:$0xff]  ;;  %s710_s28 = smov (!%p166_p10, %s355_s28), 3  ;;  %p459_p11 = scmp.ne.s32.totalorder %s652_s4, %s458_s9 }
  0x14   : > { %382 = vmatprep.subr.mxu0 %v189_v0  ;;  %v186_v3 = vld [vmem:[%s700_s1 + $0x60] sm:$0xff]  ;;  %s356_s6 = sshll.u32 %s710_s28, 3  ;;  %v185_v4 = vld [vmem:[%s700_s1 + $0x58] sm:$0xff]  ;;  %v184_v6 = vld [vmem:[%s700_s1 + $0x50] sm:$0xff]  ;;  %s462_s10 = sshll.u32 %s520_s16, 4  ;;  %s463_s10 = int_to_ptr.vmem [resolvable:$false] %s462_s10 }
  0x15   : > { %383 = vmatpush3.msra.mxu0 %v189_v0  ;;  %s610_s11 = scalar_lea.vmem %s699_s0, %s356_s6  ;;  %v183_v7 = vld [vmem:[%s700_s1 + $0x48] sm:$0xff]  ;;  %v182_v8 = vld [vmem:[%s700_s1 + $0x40] sm:$0xff]  ;;  %v181_v9 = vld [vmem:[%s700_s1 + $0x38] sm:$0xff]  ;;  %p460_p12 = pnand %p459_p11, %p581_p5 }
  0x16   : > { %384 = vmatprep.subr.mxu0 %v188_v1  ;;  %v172_v5 = vld [vmem:[%s610_s11] sm:$0xff]  ;;  %v180_v10 = vld [vmem:[%s700_s1 + $0x30] sm:$0xff]  ;;  %v179_v11 = vld [vmem:[%s700_s1 + $0x28] sm:$0xff]  ;;  %s464_s17 = scalar_lea.vmem %s463_s10, 512  ;;  %p465_p0 = scmp.lt.s32.totalorder %s652_s4, %s463_s10 }
  0x17   : > { %385 = vmatpush3.msra.mxu0 %v188_v1  ;;  %414 = vmatprep.mubr.f32.mxu0 %v172_v5  ;;  %v178_v12 = vld [vmem:[%s700_s1 + $0x20] sm:$0xff]  ;;  %v177_v13 = vld [vmem:[%s700_s1 + $0x18] sm:$0xff]  ;;  %v176_v14 = vld [vmem:[%s700_s1 + $0x10] sm:$0xff]  ;;  %p461_p13 = pneg %p460_p12  ;;  %p466_p1 = scmp.lt.s32.totalorder %s464_s17, %s458_s9 }
  0x18   : > { %386 = vmatprep.subr.mxu0 %v187_v2  ;;  %v175_v15 = vld [vmem:[%s700_s1 + $0x8] sm:$0xff]  ;;  %v174_v16 = vld [vmem:[%s700_s1] sm:$0xff] }
  0x19   : > { %387 = vmatpush3.msra.mxu0 %v187_v2  ;;  %v173_v17 = vld [vmem:[%s610_s11 + $0x8] sm:$0xff]  ;;  %v357_v18 = vld [vmem:[%s701_s2] ss:$0 sm:$0xff]  ;;  %p467_p2 = por %p466_p1, %p465_p0 }
  0x1a   : > { %388 = vmatprep.subr.mxu0 %v186_v3 }
  0x1b   : > { %389 = vmatpush3.msra.mxu0 %v186_v3  ;;  %p468_p3 = pnand %p467_p2, %p461_p13 }
  0x1c   : > { %390 = vmatprep.subr.mxu0 %v185_v4 }
  0x1d   : > { %391 = vmatpush3.msra.mxu0 %v185_v4 }
  0x1e   : > { %392 = vmatprep.subr.mxu0 %v184_v6 }
  0x1f   : > { %393 = vmatpush3.msra.mxu0 %v184_v6 }
  0x20   : > { %394 = vmatprep.subr.mxu0 %v183_v7 }
  0x21   : > { %395 = vmatpush3.msra.mxu0 %v183_v7 }
  0x22   : > { %396 = vmatprep.subr.mxu0 %v182_v8 }
  0x23   : > { %397 = vmatpush3.msra.mxu0 %v182_v8 }
  0x24   : > { %398 = vmatprep.subr.mxu0 %v181_v9 }
  0x25   : > { %399 = vmatpush3.msra.mxu0 %v181_v9 }
  0x26   : > { %400 = vmatprep.subr.mxu0 %v180_v10 }
  0x27   : > { %401 = vmatpush3.msra.mxu0 %v180_v10 }
  0x28   : > { %402 = vmatprep.subr.mxu0 %v179_v11 }
  0x29   : > { %403 = vmatpush3.msra.mxu0 %v179_v11 }
  0x2a   : > { %404 = vmatprep.subr.mxu0 %v178_v12 }
  0x2b   : > { %405 = vmatpush3.msra.mxu0 %v178_v12 }
  0x2c   : > { %406 = vmatprep.subr.mxu0 %v177_v13 }
  0x2d   : > { %407 = vmatpush3.msra.mxu0 %v177_v13 }
  0x2e   : > { %408 = vmatprep.subr.mxu0 %v176_v14 }
  0x2f   : > { %409 = vmatpush3.msra.mxu0 %v176_v14 }
  0x30   : > { %410 = vmatprep.subr.mxu0 %v175_v15 }
  0x31   : > { %411 = vmatpush3.msra.mxu0 %v175_v15 }
  0x32   : > { %412 = vmatprep.subr.mxu0 %v174_v16 }
  0x33   : > { %413 = vmatpush3.msra.mxu0 %v174_v16 }
  0x34   : > { %415 = vmatmul.mubr.f32.vlgmr.msra.gmra.mxu0 %v173_v17 }
  0xf4   : > { %v416_v19 = vpop.f32.mrf.mxu0 }
  0xf5   : > { %v269_v20 = vadd.f32 %v416_v19, %v357_v18 }
  0xf6   : > { %v263_v21 = vpop.f32.mrf.mxu0 }
  0xf7   : > { %273 = vst [vmem:[%s164_s30 + $0x8] sm:$0xff] %v269_v20  ;;  %v264_v22 = vadd.f32 %v357_v18, %v263_v21 }
  0xf9   : > { %272 = vst [vmem:[%s164_s30] sm:$0xff] %v264_v22 }
  0xfa   : > { %471 = shalt.err (!%p468_p3)
}
  0xfb   : > { %s472_s19 = scalar_lea.hbm %s657_s7, 256  ;;  %s476_s25 = scalar_lea.hbm %s702_s3, 512 }
  0xfc   : > { %p473_p4 = scmp.ne.s32.totalorder %s657_s7, %s472_s19  ;;  %p477_p9 = scmp.lt.s32.totalorder %s657_s7, %s702_s3 }
  0xfd   : > { %p478_p10 = scmp.lt.s32.totalorder %s476_s25, %s472_s19 }
  0xfe   : > { %p474_p7 = pnand %p473_p4, %p581_p5 }
  0xff   : > { %p479_p11 = por %p478_p10, %p477_p9 }
 0x100   : > { %p475_p8 = pneg %p474_p7 }
 0x102   : > { %p480_p12 = pnand %p479_p11, %p475_p8 }
 0x104   : > { %483 = shalt.err (!%p480_p12)
}
 0x105   : > { %s521_s28 = smov 128   ;;  %s522_s29 = smov 8  }
 0x106   : > { %417 = dma.vmem_to_hbm [thread:$0]  (%p581_p5), %s652_s4, 256, %s657_s7, %s659_s8, %s521_s28, %s521_s28, %s522_s29  }
 0x107 PF: > { %p423_p13 = scmp.ge.s32.totalorder %s518_s15, 2  ;;  %s303_s30 = sand.u32 1, %s506_s12  }
 0x108   : > { %s304_s5 = scalar_lea.sflag [#allocation3], %s303_s30 }
 0x109   : > { %p420_p0 = pnand %p423_p13, %p585_p6 }
 0x10b   : > { %p421_p1 = pneg %p420_p0 }
 0x10d   : > { %501 = dma.done.wait (%p421_p1), %s304_s5, 256  }
 0x10e   : > { %503 = vsyncadd (%p421_p1), %s304_s5, 4294967040  ;;  %p13_p2 = scmp.ge.s32.totalorder %s568_s18, 4   ;;  %s705_s12 = smov %s510_s13 }
 0x10f   : > { %s706_s13 = smov %s514_s14  ;;  %s707_s14 = smov %s579_s21 }
 0x110   : > { %s708_s15 = smov %s568_s18  ;;  %15 = sbr.rel (!%p13_p2) target bundleno = 3 (0x3), region = 67 }
 0x115   :  { %309 = vsyncpa [#allocation3], 1 }
 0x116   :  { %311 = vsyncpa [#allocation3 + $0x1], 1 }

</bundles_post_ra>
